<compile_context>
chip_gen: v7x
topology: tpu7x:2x2x1
jax: 0.10.0
libtpu: 0.0.40
codegen_flags: <defaults>
</compile_context>

<pallas_src>
import functools

import jax
import jax.numpy as jnp
from jax.experimental import pallas as pl
from jax.experimental.pallas import tpu as pltpu


def _self_attention_kernel(x_ref, wqkv_ref, bqkv_ref, wproj_ref, bproj_ref,
                           kvmask_ref, gmask_ref, out_ref, *, num_heads):
    # x_ref:     (1, N, C)      one batch element (grid over B)
    # wqkv_ref:  (C, 3C)        scale folded into the Q columns
    # bqkv_ref:  (1, 3C)
    # wproj_ref: (C, C)         bproj_ref: (1, C)
    # kvmask_ref:(H*N, C)       block-diagonal head mask, 0/1
    # gmask_ref: (H*N, H*N)     per-head group-sum matrix, 0/1
    # out_ref:   (1, N, C)
    _, N, C = x_ref.shape
    H = num_heads
    f32 = jnp.float32

    x = x_ref[0]                                                 # (N, C)

    # --- Fused QKV projection: one MXU matmul, 3C-lane output. -------------
    qkv = jnp.dot(x, wqkv_ref[...], preferred_element_type=f32)
    qkv = qkv + bqkv_ref[...].astype(f32)                        # (N, 3C)

    q = qkv[:, :C]                                               # scale folded
    k = qkv[:, C:2 * C]
    v = qkv[:, 2 * C:]

    # --- Block-diagonal K / V slabs: all heads in one matmul each. ---------
    kvmask = kvmask_ref[...].astype(f32)                         # (H*N, C)
    k_bd = jnp.broadcast_to(k[None], (H, N, C)).reshape(H * N, C) * kvmask
    v_bd = jnp.broadcast_to(v[None], (H, N, C)).reshape(H * N, C) * kvmask

    # Scores for every head at once: contract on C (rhs-last, flash-attn
    # style dot_general) -> (N, H*N); column h*N + k is head h, key k.
    s = jnp.einsum("qc,jc->qj", q, k_bd, preferred_element_type=f32)

    # --- Segmented softmax over each head's group of N columns. ------------
    s = s - jnp.max(s, axis=-1, keepdims=True)    # row max: valid per group
    p = jnp.exp(s)                                               # (N, H*N)
    # Per-head denominators broadcast to every column of the group with one
    # constant-matrix matmul (no minor-dim reshape).
    denom = jnp.dot(p, gmask_ref[...].astype(f32), preferred_element_type=f32)
    # approx=True uses the EUP slot; switch to approx=False for exact ULPs.
    p = p * pl.reciprocal(denom, approx=True)

    # --- attn @ V for all heads; heads land already merged in (N, C). ------
    o = jnp.dot(p, v_bd, preferred_element_type=f32)             # (N, C)

    # --- Output projection + bias. ------------------------------------------
    out = jnp.dot(o, wproj_ref[...], preferred_element_type=f32)
    out = out + bproj_ref[...].astype(f32)
    out_ref[0] = out.astype(out_ref.dtype)


def self_attention_pallas(x, wqkv, bqkv, wproj, bproj, *, num_heads, scale):
    """x: (B, N, C). wqkv: (C, 3C), bqkv: (3C,), wproj: (C, C), bproj: (C,).

    Weights are stored transposed relative to nn.Linear (i.e. y = x @ W + b).
    """
    B, N, C = x.shape
    H = num_heads
    hd = C // H
    assert C % H == 0

    # Fold the softmax scale into the Q columns of the fused QKV projection.
    scale_cols = jnp.concatenate([jnp.full((C,), scale, wqkv.dtype),
                                  jnp.ones((2 * C,), wqkv.dtype)])
    wqkv_s = wqkv * scale_cols[None, :]
    bqkv_s = (bqkv * scale_cols).reshape(1, 3 * C)
    bp = bproj.reshape(1, C)

    # Constant block-diagonal head masks, built once at trace time.
    head_of_row = jnp.arange(H * N) // N                   # (H*N,)
    head_of_col = jnp.arange(C) // hd                      # (C,)
    kvmask = (head_of_row[:, None] == head_of_col[None, :]).astype(x.dtype)
    gmask = (head_of_row[:, None] == head_of_row[None, :]).astype(x.dtype)

    kernel = functools.partial(_self_attention_kernel, num_heads=H)
    return pl.pallas_call(
        kernel,
        out_shape=jax.ShapeDtypeStruct((B, N, C), x.dtype),
        grid=(B,),
        in_specs=[
            pl.BlockSpec((1, N, C), lambda b: (b, 0, 0)),          # x
            pl.BlockSpec((C, 3 * C), lambda b: (0, 0)),            # wqkv
            pl.BlockSpec((1, 3 * C), lambda b: (0, 0)),            # bqkv
            pl.BlockSpec((C, C), lambda b: (0, 0)),                # wproj
            pl.BlockSpec((1, C), lambda b: (0, 0)),                # bproj
            pl.BlockSpec((H * N, C), lambda b: (0, 0)),            # kvmask
            pl.BlockSpec((H * N, H * N), lambda b: (0, 0)),        # gmask
        ],
        out_specs=pl.BlockSpec((1, N, C), lambda b: (b, 0, 0)),
        compiler_params=pltpu.CompilerParams(
            dimension_semantics=("parallel",)),
    )(x, wqkv_s, bqkv_s, wproj, bp, kvmask, gmask)


def self_attention_reference(x, wqkv, bqkv, wproj, bproj, *, num_heads, scale):
    """Pure-JAX reference mirroring the PyTorch forward (dropout=0)."""
    B, N, C = x.shape
    hd = C // num_heads
    qkv = x @ wqkv + bqkv                                  # (B, N, 3C)
    qkv = qkv.reshape(B, N, 3, num_heads, hd).transpose(2, 0, 3, 1, 4)
    q, k, v = qkv[0], qkv[1], qkv[2]                       # (B, H, N, hd)
    attn = jnp.einsum("bhqd,bhkd->bhqk", q, k) * scale
    attn = jax.nn.softmax(attn, axis=-1)
    out = jnp.einsum("bhqk,bhkd->bhqd", attn, v)           # (B, H, N, hd)
    out = out.transpose(0, 2, 1, 3).reshape(B, N, C)
    return out @ wproj + bproj


if __name__ == "__main__":
    # Small shapes consistent with the module: B=2, N=8, C=32, heads=8.
    B, N, C, heads = 2, 8, 32, 8
    head_dim = C // heads
    scale = head_dim ** (-0.5)

    key = jax.random.PRNGKey(0)
    kx, kw1, kb1, kw2, kb2 = jax.random.split(key, 5)

    x = jax.random.normal(kx, (B, N, C), dtype=jnp.float32)
    # nn.Linear(dim, dim*3): weight (3C, C), bias (3C,).  Stored transposed.
    wqkv = 0.1 * jax.random.normal(kw1, (C, 3 * C), dtype=jnp.float32)
    bqkv = 0.1 * jax.random.normal(kb1, (3 * C,), dtype=jnp.float32)
    # nn.Linear(dim, dim): weight (C, C), bias (C,).  Stored transposed.
    wproj = 0.1 * jax.random.normal(kw2, (C, C), dtype=jnp.float32)
    bproj = 0.1 * jax.random.normal(kb2, (C,), dtype=jnp.float32)

    out = self_attention_pallas(x, wqkv, bqkv, wproj, bproj,
                                num_heads=heads, scale=scale)
    out = jax.block_until_ready(out)

    ref = self_attention_reference(x, wqkv, bqkv, wproj, bproj,
                                   num_heads=heads, scale=scale)
    assert out.shape == (B, N, C)
    # approx=True reciprocal trades a few ULPs in the softmax denominator.
    assert jnp.allclose(out, ref, atol=1e-3, rtol=1e-3), "mismatch vs reference"

    print("KERNEL_OK")
</pallas_src>

<mosaic_0001>
module attributes {stable_mosaic.version = 11 : i64} {
  func.func @_self_attention_kernel(%arg0: i32, %arg1: memref<1x8x32xf32, #tpu.memory_space<vmem>>, %arg2: memref<32x96xf32, #tpu.memory_space<vmem>>, %arg3: memref<1x96xf32, #tpu.memory_space<vmem>>, %arg4: memref<32x32xf32, #tpu.memory_space<vmem>>, %arg5: memref<1x32xf32, #tpu.memory_space<vmem>>, %arg6: memref<64x32xf32, #tpu.memory_space<vmem>>, %arg7: memref<64x64xf32, #tpu.memory_space<vmem>>, %arg8: memref<1x8x32xf32, #tpu.memory_space<vmem>>) attributes {dimension_semantics = [#tpu.dimension_semantics<parallel>], iteration_bounds = array<i64: 2>, scalar_prefetch = 0 : i64, scratch_operands = 0 : i64, tpu.core_type = #tpu.core_type<tc>, window_params = [{transform_indices = @transform_0, window_bounds = array<i64: 1, 8, 32>}, {pipeline_mode = #tpu.pipeline_mode<synchronous>, transform_indices = @transform_1, window_bounds = array<i64: 32, 96>}, {pipeline_mode = #tpu.pipeline_mode<synchronous>, transform_indices = @transform_2, window_bounds = array<i64: 1, 96>}, {pipeline_mode = #tpu.pipeline_mode<synchronous>, transform_indices = @transform_3, window_bounds = array<i64: 32, 32>}, {pipeline_mode = #tpu.pipeline_mode<synchronous>, transform_indices = @transform_4, window_bounds = array<i64: 1, 32>}, {pipeline_mode = #tpu.pipeline_mode<synchronous>, transform_indices = @transform_5, window_bounds = array<i64: 64, 32>}, {pipeline_mode = #tpu.pipeline_mode<synchronous>, transform_indices = @transform_6, window_bounds = array<i64: 64, 64>}, {transform_indices = @transform_7, window_bounds = array<i64: 1, 8, 32>}]} {
    %c0 = arith.constant 0 : index
    %c0_0 = arith.constant 0 : index
    %c0_1 = arith.constant 0 : index
    %0 = vector.load %arg1[%c0, %c0_0, %c0_1] : memref<1x8x32xf32, #tpu.memory_space<vmem>>, vector<1x8x32xf32>
    %1 = vector.shape_cast %0 : vector<1x8x32xf32> to vector<8x32xf32>
    %c0_2 = arith.constant 0 : index
    %c0_3 = arith.constant 0 : index
    %2 = vector.load %arg2[%c0_2, %c0_3] : memref<32x96xf32, #tpu.memory_space<vmem>>, vector<32x96xf32>
    %cst = arith.constant dense<0.000000e+00> : vector<8x96xf32>
    %3 = tpu.matmul %1, %2, %cst {dimension_numbers = #tpu.dot_dimension_numbers<[1], [0], [0], [1], [0, 0, 1, 1], [], []>} : vector<8x32xf32>, vector<32x96xf32>, vector<8x96xf32> -> vector<8x96xf32>
    %c0_4 = arith.constant 0 : index
    %c0_5 = arith.constant 0 : index
    %4 = vector.load %arg3[%c0_4, %c0_5] : memref<1x96xf32, #tpu.memory_space<vmem>>, vector<1x96xf32>
    %5 = vector.broadcast %4 : vector<1x96xf32> to vector<8x96xf32>
    %6 = arith.addf %3, %5 : vector<8x96xf32>
    %7 = vector.extract_strided_slice %6 {offsets = [0, 0], sizes = [8, 32], strides = [1, 1]} : vector<8x96xf32> to vector<8x32xf32>
    %8 = vector.extract_strided_slice %6 {offsets = [0, 32], sizes = [8, 32], strides = [1, 1]} : vector<8x96xf32> to vector<8x32xf32>
    %9 = vector.extract_strided_slice %6 {offsets = [0, 64], sizes = [8, 32], strides = [1, 1]} : vector<8x96xf32> to vector<8x32xf32>
    %c0_6 = arith.constant 0 : index
    %c0_7 = arith.constant 0 : index
    %10 = vector.load %arg6[%c0_6, %c0_7] : memref<64x32xf32, #tpu.memory_space<vmem>>, vector<64x32xf32>
    %11 = vector.shape_cast %8 : vector<8x32xf32> to vector<1x8x32xf32>
    %12 = vector.shape_cast %11 : vector<1x8x32xf32> to vector<1x8x32xf32>
    %13 = vector.broadcast %12 : vector<1x8x32xf32> to vector<8x8x32xf32>
    %14 = vector.shape_cast %13 : vector<8x8x32xf32> to vector<64x32xf32>
    %15 = arith.mulf %14, %10 : vector<64x32xf32>
    %16 = vector.shape_cast %9 : vector<8x32xf32> to vector<1x8x32xf32>
    %17 = vector.shape_cast %16 : vector<1x8x32xf32> to vector<1x8x32xf32>
    %18 = vector.broadcast %17 : vector<1x8x32xf32> to vector<8x8x32xf32>
    %19 = vector.shape_cast %18 : vector<8x8x32xf32> to vector<64x32xf32>
    %20 = arith.mulf %19, %10 : vector<64x32xf32>
    "tpu.trace_start"() <{level = 10 : i32, message = "qc,jc->qj"}> : () -> ()
    %cst_8 = arith.constant dense<0.000000e+00> : vector<8x64xf32>
    %21 = tpu.matmul %7, %15, %cst_8 {dimension_numbers = #tpu.dot_dimension_numbers<[1], [1], [0], [0], [0, 0, 1, 0], [], []>} : vector<8x32xf32>, vector<64x32xf32>, vector<8x64xf32> -> vector<8x64xf32>
    "tpu.trace_stop"() : () -> ()
    %cst_9 = arith.constant dense<0xFF800000> : vector<8xf32>
    %22 = vector.multi_reduction <maximumf>, %21, %cst_9 [1] : vector<8x64xf32> to vector<8xf32>
    %23 = vector.shape_cast %22 : vector<8xf32> to vector<8x1xf32>
    %24 = vector.broadcast %23 : vector<8x1xf32> to vector<8x64xf32>
    %25 = arith.subf %21, %24 : vector<8x64xf32>
    %26 = math.exp %25 : vector<8x64xf32>
    %c0_10 = arith.constant 0 : index
    %c0_11 = arith.constant 0 : index
    %27 = vector.load %arg7[%c0_10, %c0_11] : memref<64x64xf32, #tpu.memory_space<vmem>>, vector<64x64xf32>
    %cst_12 = arith.constant dense<0.000000e+00> : vector<8x64xf32>
    %28 = tpu.matmul %26, %27, %cst_12 {dimension_numbers = #tpu.dot_dimension_numbers<[1], [0], [0], [1], [0, 0, 1, 1], [], []>} : vector<8x64xf32>, vector<64x64xf32>, vector<8x64xf32> -> vector<8x64xf32>
    %29 = tpu.reciprocal %28 {approx = true} : vector<8x64xf32> -> vector<8x64xf32>
    %30 = arith.mulf %26, %29 : vector<8x64xf32>
    %cst_13 = arith.constant dense<0.000000e+00> : vector<8x32xf32>
    %31 = tpu.matmul %30, %20, %cst_13 {dimension_numbers = #tpu.dot_dimension_numbers<[1], [0], [0], [1], [0, 0, 1, 1], [], []>} : vector<8x64xf32>, vector<64x32xf32>, vector<8x32xf32> -> vector<8x32xf32>
    %c0_14 = arith.constant 0 : index
    %c0_15 = arith.constant 0 : index
    %32 = vector.load %arg4[%c0_14, %c0_15] : memref<32x32xf32, #tpu.memory_space<vmem>>, vector<32x32xf32>
    %cst_16 = arith.constant dense<0.000000e+00> : vector<8x32xf32>
    %33 = tpu.matmul %31, %32, %cst_16 {dimension_numbers = #tpu.dot_dimension_numbers<[1], [0], [0], [1], [0, 0, 1, 1], [], []>} : vector<8x32xf32>, vector<32x32xf32>, vector<8x32xf32> -> vector<8x32xf32>
    %c0_17 = arith.constant 0 : index
    %c0_18 = arith.constant 0 : index
    %34 = vector.load %arg5[%c0_17, %c0_18] : memref<1x32xf32, #tpu.memory_space<vmem>>, vector<1x32xf32>
    %35 = vector.broadcast %34 : vector<1x32xf32> to vector<8x32xf32>
    %36 = arith.addf %33, %35 : vector<8x32xf32>
    %c0_19 = arith.constant 0 : index
    %c0_20 = arith.constant 0 : index
    %c0_21 = arith.constant 0 : index
    %37 = vector.load %arg8[%c0_19, %c0_20, %c0_21] : memref<1x8x32xf32, #tpu.memory_space<vmem>>, vector<1x8x32xf32>
    %38 = vector.shape_cast %37 : vector<1x8x32xf32> to vector<8x32xf32>
    %39 = vector.shape_cast %36 : vector<8x32xf32> to vector<1x8x32xf32>
    tpu.vector_store %arg8[%c0_19, %c0_20, %c0_21], %39 {strides = array<i32>} : memref<1x8x32xf32, #tpu.memory_space<vmem>>, vector<1x8x32xf32>,
    return
  }
  func.func @transform_0(%arg0: i32) -> (i32, i32, i32) {
    %c0_i32 = arith.constant 0 : i32
    %c0_i32_0 = arith.constant 0 : i32
    %c0_i32_1 = arith.constant 0 : i32
    return %arg0, %c0_i32, %c0_i32_0 : i32, i32, i32
  }
  func.func @transform_1(%arg0: i32) -> (i32, i32) {
    %c0_i32 = arith.constant 0 : i32
    %c0_i32_0 = arith.constant 0 : i32
    %c0_i32_1 = arith.constant 0 : i32
    return %c0_i32, %c0_i32_0 : i32, i32
  }
  func.func @transform_2(%arg0: i32) -> (i32, i32) {
    %c0_i32 = arith.constant 0 : i32
    %c0_i32_0 = arith.constant 0 : i32
    %c0_i32_1 = arith.constant 0 : i32
    return %c0_i32, %c0_i32_0 : i32, i32
  }
  func.func @transform_3(%arg0: i32) -> (i32, i32) {
    %c0_i32 = arith.constant 0 : i32
    %c0_i32_0 = arith.constant 0 : i32
    %c0_i32_1 = arith.constant 0 : i32
    return %c0_i32, %c0_i32_0 : i32, i32
  }
  func.func @transform_4(%arg0: i32) -> (i32, i32) {
    %c0_i32 = arith.constant 0 : i32
    %c0_i32_0 = arith.constant 0 : i32
    %c0_i32_1 = arith.constant 0 : i32
    return %c0_i32, %c0_i32_0 : i32, i32
  }
  func.func @transform_5(%arg0: i32) -> (i32, i32) {
    %c0_i32 = arith.constant 0 : i32
    %c0_i32_0 = arith.constant 0 : i32
    %c0_i32_1 = arith.constant 0 : i32
    return %c0_i32, %c0_i32_0 : i32, i32
  }
  func.func @transform_6(%arg0: i32) -> (i32, i32) {
    %c0_i32 = arith.constant 0 : i32
    %c0_i32_0 = arith.constant 0 : i32
    %c0_i32_1 = arith.constant 0 : i32
    return %c0_i32, %c0_i32_0 : i32, i32
  }
  func.func @transform_7(%arg0: i32) -> (i32, i32, i32) {
    %c0_i32 = arith.constant 0 : i32
    %c0_i32_0 = arith.constant 0 : i32
    %c0_i32_1 = arith.constant 0 : i32
    return %arg0, %c0_i32, %c0_i32_0 : i32, i32, i32
  }
}

</mosaic_0001>

<bundles_post_ra>
// kernel: tpu_custom_call.1
= control target key start
LH: loop header
LB: loop body
LE: loop exit
PB: predicated region body
PF: predicated region fallthrough
CT: control target
= control target key end

     0   :  { %12 = vsyncpa [#allocation3], 0  ;;  %s1655_s0 = inlined_call_operand.vmem [shape: f32[2,8,32], index: 0, kind: input, shape index: {}]   ;;  %s1656_s1 = inlined_call_operand.vmem [shape: f32[32,96], index: 1, kind: input, shape index: {}]   ;;  %s1657_s2 = inlined_call_operand.vmem [shape: f32[1,96], index: 2, kind: input, shape index: {}]   ;;  %s1658_s3 = inlined_call_operand.hbm [shape: f32[32,32], index: 3, kind: input, shape index: {}]   ;;  %s1659_s4 = inlined_call_operand.vmem [shape: f32[1,32], index: 4, kind: input, shape index: {}]   ;;  %s1660_s5 = inlined_call_operand.vmem [shape: f32[64,32], index: 5, kind: input, shape index: {}]   ;;  %s1661_s6 = inlined_call_operand.vmem [shape: f32[64,64], index: 6, kind: input, shape index: {}]   ;;  %s1662_s7 = inlined_call_operand.hbm [shape: f32[2,8,32], index: 7, kind: output, shape index: {}]  }
   0x1   :  { %13 = vsyncpa [#allocation4], 0 }
   0x2   :  { %15 = vsyncpa [#allocation4 + $0x1], 0  ;;  %s1376_s24 = smov 0   ;;  %s1378_s25 = smov 0  }
   0x3   :  { %s1380_s26 = smov 0   ;;  %s1382_s27 = smov 0  }
   0x4 LB: > { %s1397_s28 = sadd.s32 4294967295, %s1324_s27   ;;  %s933_s29 = sadd.s32 4294967294, %s1324_s27   ;;  %s1324_s27 = sphi %s1382_s27, %s1680_s27   ;;  %s1320_s26 = sphi %s1380_s26, %s1679_s26   ;;  %s1316_s25 = sphi %s1378_s25, %s1678_s25   ;;  %s1312_s24 = sphi %s1376_s24, %s1677_s24  }
   0x5   : > { %s1401_s30 = sadd.s32 1, %s1324_s27   ;;  %s180_s8 = sadd.s32 1, %s1320_s26 }
   0x6   : > { %s177_s9 = ssub.s32 %s1324_s27, %s1401_s30  ;;  %p190_p0 = scmp.ne.s32.totalorder %s1320_s26, %s1316_s25 }
   0x7   : > { %p178_p1 = scmp.eq.s32.totalorder %s177_s9, 0  ;;  %p191_p2 = scmp.eq.s32.totalorder %s1397_s28, 1 }
   0x8   : > { %p196_p3 = scmp.ne.s32.totalorder %s1316_s25, %s1312_s24  ;;  %p197_p4 = scmp.eq.s32.totalorder %s933_s29, 1 }
   0x9   : > { %s1412_s10 = scalar_select %p178_p1, %s1320_s26, %s180_s8  }
   0xa   : > { %p1414_p5 = por %p191_p2, %p190_p0  ;;  %p1418_p6 = por %p197_p4, %p196_p3 }
   0xb   : > { %p934_p7 = scmp.ge.s32.totalorder %s1324_s27, 1  ;;  %p204_p8 = scmp.lt.s32.totalorder %s1324_s27, 3 }
   0xc   : > { %s1666_s11 = scalar_select %p1414_p5, 1, 0 }
   0xd   : > { %s1667_s12 = scalar_select %p1418_p6, 1, 0 }
   0xe   : > { %p1663_p9 = scmp.eq.s32.totalorder %s1397_s28, 0  ;;  %p1425_p10 = pnand %p934_p7, %p204_p8 }
   0xf   : > { %s1326_s14 = smov [#allocation2]   ;;  %s1230_s19 = scalar_lea.hbm %s1658_s3, 512 }
  0x10   : > { %s1668_s13 = scalar_select %p1425_p10, 1, 0 }
  0x11   : > { %s222_s15 = sshll.u32 %s1326_s14, 4  ;;  %p1134_p11 = pneg %p1425_p10  ;;  %s223_s15 = int_to_ptr.vmem [resolvable:$true] %s222_s15 }
  0x12   : > { %p1231_p13 = scmp.ne.s32.totalorder %s1658_s3, %s1230_s19  ;;  %p1237_p3 = scmp.lt.u32.totalorder %s1230_s19, %s1658_s3 }
  0x13   : > { %p1433_p12 = pnand %p1663_p9, %p1134_p11 }
  0x15   : > { %p1232_p0 = pneg %p1433_p12 }
  0x17   : > { %p1233_p1 = pnand %p1232_p0, %p1231_p13 }
  0x19   : > { %p1234_p2 = pneg %p1233_p1 }
  0x1b   : > { %p1239_p4 = pnand %p1237_p3, %p1234_p2 }
  0x1d   : > { %1242 = shalt.err (!%p1239_p4)
}
  0x1e   : > { %s1243_s29 = scalar_lea.vmem %s223_s15, 512  ;;  %p1251_p9 = scmp.lt.s32.totalorder %s223_s15, %s223_s15 }
  0x1f   : > { %p1244_p7 = scmp.ne.s32.totalorder %s223_s15, %s1243_s29  ;;  %p1252_p6 = scmp.lt.s32.totalorder %s1243_s29, %s1243_s29 }
  0x21   : > { %p1246_p8 = pnand %p1244_p7, %p1232_p0  ;;  %p1253_p5 = por %p1252_p6, %p1251_p9 }
  0x23   : > { %p1247_p11 = pneg %p1246_p8 }
  0x25   : > { %p1254_p10 = pnand %p1253_p5, %p1247_p11 }
  0x27   : > { %1257 = shalt.err (!%p1254_p10)
}
  0x28   : > { %s1327_s8 = smov 128   ;;  %s1328_s9 = smov 8  }
  0x29   : > { %1137 = dma.hbm_to_vmem [thread:$0]  (!%p1433_p12), %s1658_s3, 512, %s223_s15, [#allocation3], %s1327_s8, %s1327_s8, %s1328_s9  }
  0x2a   : > { %p1670_p13 = scmp.ne.s32.totalorder %s1668_s13, 0 }
  0x2b   : > { %p1671_p1 = scmp.eq.s32.totalorder (!%p1670_p13), %s1397_s28, 0 }
  0x2c   : > { %254 = sbr.rel (%p1670_p13) target bundleno = 1465 (0x5b9), region = 48 }
  0x33   : > { %1303 = dma.done.wait (%p1671_p1), [#allocation3], 512   ;;  %p1672_p0 = pmov %p1671_p1 }
  0x34   : > { %p285_p5 = scmp.lt.s32.totalorder %s1397_s28, 1  ;;  %v1329_v0 = vmov 0.0|0.0   ;;  %vm1330_vm0 = vmmov 0   ;;  %v1331_v1 = vmov 0.0   ;;  %v290_v2 = vld [vmem:[%s1656_s1] sm:$0xff]  ;;  %v291_v3 = vld [vmem:[%s1656_s1 + $0x8] sm:$0xff] }
  0x35   : > { %1305 = vsyncadd (%p1672_p0), [#allocation3], 4294966784  ;;  %1076 = vmatprep.subr.bf16.mxu0 %v1329_v0  ;;  %1005 = vmatprep.mubr.msk.f32.mxu0 %vm1330_vm0, %v1331_v1  ;;  %v292_v4 = vld [vmem:[%s1656_s1 + $0x10] sm:$0xff]  ;;  %v1077_v5 = vpack.c.bf16 %v291_v3, %v290_v2  ;;  %v293_v6 = vld [vmem:[%s1656_s1 + $0x18] sm:$0xff]  ;;  %s1332_s14 = smov 32   ;;  %vm301_vm1 = vcmask 261120  }
  0x36   : > { %1082 = vmatprep.subr.bf16.mxu1 %v1329_v0  ;;  %1024 = vmatprep.mubr.msk.f32.mxu1 %vm1330_vm0, %v1331_v1  ;;  %s286_s13 = scalar_select %p285_p5, %s1397_s28, 1  ;;  %v377_v7 = vld [vmem:[%s1660_s5 + $0x10] sm:$0xff]  ;;  %v375_v8 = vld [vmem:[%s1660_s5] sm:$0xff]  ;;  %v1080_v9 = vpack.c.bf16 %v293_v6, %v292_v4  ;;  %v378_v10 = vld [vmem:[%s1660_s5 + $0x18] sm:$0xff]  ;;  %vm568_vm3 = vcmask 523264  }
  0x37   : > { %395 = vrot.lane.b32.xlu1 %v377_v7, %s1332_s14  ;;  %1078 = vmatpush3.bf16.msra.mxu0 %v1077_v5  ;;  %v376_v11 = vld [vmem:[%s1660_s5 + $0x8] sm:$0xff]  ;;  %v379_v14 = vld [vmem:[%s1660_s5 + $0x20] sm:$0xff]  ;;  %v382_v15 = vld [vmem:[%s1660_s5 + $0x38] sm:$0xff]  ;;  %p1675_p9 = scmp.ne.s32.totalorder %s1666_s11, 0 }
  0x38   : > { %s940_s29 = sshll.u32 %s286_s13, 3  ;;  %391 = vrot.lane.b32.xlu0 %v375_v8, %s1332_s14  ;;  %1079 = vmatprep.subr.bf16.mxu0 %v1329_v0  ;;  %v380_v13 = vld [vmem:[%s1660_s5 + $0x28] sm:$0xff]  ;;  %v381_v16 = vld [vmem:[%s1660_s5 + $0x30] sm:$0xff]  ;;  %v941_v23 = vld [vmem:[%s1657_s2] ss:$0 sm:$0xff] }
  0x39   : > { %s288_s20 = scalar_lea.vmem %s1655_s0, %s940_s29  ;;  %vm1534_vm2 = vmpackc.low %vm301_vm1, %vm301_vm1  ;;  %s957_s29 = sshll.u32 %s1397_s28, 7 }
  0x3a   : > { %v289_v12 = vld [vmem:[%s288_s20] sm:$0xff]  ;;  %s1334_s20 = smov 64   ;;  %s1612_s19 = scalar_lea.hbm %s1662_s7, %s957_s29 }
  0x3b   : > { %397 = vrot.lane.b32.xlu1 %v378_v10, %s1332_s14  ;;  %1081 = vmatpush3.bf16.msra.mxu0 %v1080_v9  ;;  %s1335_s28 = smov [#allocation5]  }
  0x3c   : > { %393 = vrot.lane.b32.xlu0 %v376_v11, %s1332_s14  ;;  %1098 = vmatprep.subr.bf16.mxu0 %v1329_v0  ;;  %s1262_s22 = sshll.u32 %s1335_s28, 4  ;;  %s1263_s22 = int_to_ptr.vmem [resolvable:$false] %s1262_s22 }
  0x3d   : > { %s1264_s23 = scalar_lea.vmem %s1263_s22, 256 }
  0x3e   : > { %1006 = vmatmul.mubr.msk.f32.vlgmr.msra.gmra.mrb[0].mxu0 %vm301_vm1, %v289_v12 }
  0x3f   : > { %401 = vrot.lane.b32.xlu1 %v380_v13, %s1332_s14  ;;  %1043 = vmatprep.mubr.msk.f32.mxu0 %vm1330_vm0, %v1331_v1 }
  0x40   : > { %399 = vrot.lane.b32.xlu0 %v379_v14, %s1332_s14 }
  0x43   : > { %405 = vrot.lane.b32.xlu1 %v382_v15, %s1332_s14 }
  0x44   : > { %403 = vrot.lane.b32.xlu0 %v381_v16, %s1332_s14  ;;  %s1333_s14 = smov 96  }
  0xa9   : > { %v396_v17 = vpop.permute.xlu1 %395 }
  0xaa   : > { %v392_v18 = vpop.permute.xlu0 %391 }
  0xad   : > { %v398_v19 = vpop.permute.xlu1 %397 }
  0xae   : > { %v394_v20 = vpop.permute.xlu0 %393 }
  0xb1   : > { %v402_v21 = vpop.permute.xlu1 %401 }
  0xb2   : > { %v400_v22 = vpop.permute.xlu0 %399 }
  0xb5   : > { %v406_v27 = vpop.permute.xlu1 %405 }
  0xb6   : > { %v404_v28 = vpop.permute.xlu0 %403 }
 0x111   : > { %v371_v24 = vpop.f32.mrb[0].mxu0 }
 0x112   : > { %v1514_v25 = vadd.f32 %v941_v23, %v371_v24  ;;  %v1007_v26 = vpop.f32.mrb[1].mxu0  ;;  %v578_v23 = vld [vmem:[%s1661_s6 + $0x18] sm:$0xff] }
 0x113   : > { %v580_v26 = vld [vmem:[%s1661_s6 + $0x28] sm:$0xff] }
 0x114   : > { %v417_v29 = vmul.f32 %v396_v17, %v1514_v25  ;;  %v418_v30 = vmul.f32 %v398_v19, %v1514_v25  ;;  %v415_v31 = vmul.f32 %v392_v18, %v1514_v25  ;;  %v416_v32 = vmul.f32 %v394_v20, %v1514_v25  ;;  %v576_v17 = vld [vmem:[%s1661_s6 + $0x8] sm:$0xff] }
 0x115   : > { %v422_v33 = vmul.f32 %v406_v27, %v1514_v25  ;;  %v421_v34 = vmul.f32 %v404_v28, %v1514_v25  ;;  %v419_v37 = vmul.f32 %v400_v22, %v1514_v25  ;;  %v420_v38 = vmul.f32 %v402_v21, %v1514_v25  ;;  %v577_v22 = vld [vmem:[%s1661_s6 + $0x10] sm:$0xff] }
 0x116   : > { %v1191_v35 = vpack.i.bf16 %v418_v30, %v417_v29  ;;  %v1186_v36 = vpack.i.bf16 %v416_v32, %v415_v31  ;;  %v1102_v24 = vpack.c.bf16 %v578_v23, %v577_v22  ;;  %v581_v28 = vld [vmem:[%s1661_s6 + $0x30] sm:$0xff]  ;;  %v582_v29 = vld [vmem:[%s1661_s6 + $0x38] sm:$0xff] }
 0x117   : > { %v1201_v39 = vpack.i.bf16 %v422_v33, %v421_v34  ;;  %v1196_v40 = vpack.i.bf16 %v420_v38, %v419_v37  ;;  %v1108_v30 = vpack.c.bf16 %v582_v29, %v581_v28 }
 0x118   : > { %1192 = vrot.lane.b32.xlu1 %v1191_v35, %s1333_s14  ;;  %1187 = vrot.lane.b32.xlu0 %v1186_v36, %s1333_s14 }
 0x11c   : > { %1202 = vrot.lane.b32.xlu1 %v1201_v39, %s1333_s14  ;;  %1197 = vrot.lane.b32.xlu0 %v1196_v40, %s1333_s14 }
 0x120   : > { %423 = vrot.lane.b32.xlu1 %v375_v8, %s1334_s20 }
 0x124   : > { %425 = vrot.lane.b32.xlu1 %v376_v11, %s1334_s20 }
 0x128   : > { %427 = vrot.lane.b32.xlu1 %v377_v7, %s1334_s20 }
 0x12c   : > { %429 = vrot.lane.b32.xlu1 %v378_v10, %s1334_s20 }
 0x130   : > { %431 = vrot.lane.b32.xlu1 %v379_v14, %s1334_s20 }
 0x134   : > { %433 = vrot.lane.b32.xlu1 %v380_v13, %s1334_s20 }
 0x138   : > { %435 = vrot.lane.b32.xlu1 %v381_v16, %s1334_s20  ;;  %v575_v16 = vld [vmem:[%s1661_s6] sm:$0xff] }
 0x139   : > { %v1099_v18 = vpack.c.bf16 %v576_v17, %v575_v16 }
 0x13b   : > { %1100 = vmatpush3.bf16.msra.mxu0 %v1099_v18 }
 0x13c   : > { %437 = vrot.lane.b32.xlu1 %v382_v15, %s1334_s20  ;;  %1101 = vmatprep.subr.bf16.mxu0 %v1329_v0 }
 0x13f   : > { %1103 = vmatpush3.bf16.msra.mxu0 %v1102_v24 }
 0x140   : > { %1104 = vmatprep.subr.bf16.mxu0 %v1329_v0 }
 0x18a   : > { %v1193_v41 = vpop.permute.xlu1 %1192  ;;  %v1188_v42 = vpop.permute.xlu0 %1187 }
 0x18b   : > { %v1190_v43 = vunpack.i.h.bf16 %v1188_v42  ;;  %v1189_v44 = vunpack.i.l.bf16 %v1188_v42  ;;  %v1195_v48 = vunpack.i.h.bf16 %v1193_v41  ;;  %v1194_v49 = vunpack.i.l.bf16 %v1193_v41 }
 0x18d   : > { %v1083_v46 = vpack.c.bf16 %v1190_v43, %v1189_v44  ;;  %v1087_v51 = vpack.c.bf16 %v1195_v48, %v1194_v49 }
 0x18e   : > { %v1203_v47 = vpop.permute.xlu1 %1202  ;;  %v1198_v53 = vpop.permute.xlu0 %1197 }
 0x18f   : > { %1085 = vmatpush3.bf16.xpose.msk.msra.mxu1 %vm1534_vm2, %v1083_v46  ;;  %v1200_v57 = vunpack.i.h.bf16 %v1198_v53  ;;  %v1199_v58 = vunpack.i.l.bf16 %v1198_v53  ;;  %v1205_v3 = vunpack.i.h.bf16 %v1203_v47  ;;  %v1204_v4 = vunpack.i.l.bf16 %v1203_v47 }
 0x190   : > { %1086 = vmatprep.subr.bf16.mxu1 %v1329_v0 }
 0x191   : > { %v1091_v60 = vpack.c.bf16 %v1200_v57, %v1199_v58  ;;  %v1095_v6 = vpack.c.bf16 %v1205_v3, %v1204_v4 }
 0x192   : > { %v424_v50 = vpop.permute.xlu1 %423 }
 0x193   : > { %v447_v54 = vmul.f32 %v424_v50, %v1514_v25 }
 0x196   : > { %v426_v52 = vpop.permute.xlu1 %425 }
 0x197   : > { %v448_v55 = vmul.f32 %v426_v52, %v1514_v25  ;;  %1089 = vmatpush3.bf16.xpose.msk.msra.mxu1 %vm1534_vm2, %v1087_v51  ;;  %v763_v51 = vld [vmem:[#allocation2] sm:$0xff]  ;;  %v764_v52 = vld [vmem:[#allocation2 + $0x8] sm:$0xff] }
 0x198   : > { %1090 = vmatprep.subr.bf16.mxu1 %v1329_v0  ;;  %v1123_v53 = vpack.c.bf16 %v764_v52, %v763_v51 }
 0x199   : > { %v1206_v56 = vpack.i.bf16 %v448_v55, %v447_v54  ;;  %v766_v54 = vld [vmem:[#allocation2 + $0x18] sm:$0xff] }
 0x19a   : > { %v428_v59 = vpop.permute.xlu1 %427 }
 0x19b   : > { %v449_v62 = vmul.f32 %v428_v59, %v1514_v25 }
 0x19e   : > { %v430_v61 = vpop.permute.xlu1 %429 }
 0x19f   : > { %v450_v63 = vmul.f32 %v430_v61, %v1514_v25  ;;  %1093 = vmatpush3.bf16.xpose.msk.msra.mxu1 %vm1534_vm2, %v1091_v60 }
 0x1a0   : > { %1094 = vmatprep.subr.bf16.mxu1 %v1329_v0 }
 0x1a1   : > { %v1211_v2 = vpack.i.bf16 %v450_v63, %v449_v62  ;;  %v954_v62 = vld [vmem:[%s1659_s4] ss:$0 sm:$0xff] }
 0x1a2   : > { %v432_v5 = vpop.permute.xlu1 %431 }
 0x1a3   : > { %1212 = vrot.lane.b32.xlu1 %v1211_v2, %s1334_s20  ;;  %v451_v8 = vmul.f32 %v432_v5, %v1514_v25 }
 0x1a6   : > { %v434_v7 = vpop.permute.xlu1 %433 }
 0x1a7   : > { %v452_v9 = vmul.f32 %v434_v7, %v1514_v25  ;;  %1097 = vmatpush3.bf16.xpose.msk.msra.mxu1 %vm1534_vm2, %v1095_v6 }
 0x1a8   : > { %1122 = vmatprep.subr.bf16.mxu1 %v1329_v0 }
 0x1a9   : > { %v1216_v10 = vpack.i.bf16 %v452_v9, %v451_v8 }
 0x1aa   : > { %v436_v11 = vpop.permute.xlu1 %435 }
 0x1ab   : > { %1217 = vrot.lane.b32.xlu1 %v1216_v10, %s1334_s20  ;;  %v453_v13 = vmul.f32 %v436_v11, %v1514_v25 }
 0x1ae   : > { %v438_v12 = vpop.permute.xlu1 %437  ;;  %1025 = vmatmul.mubr.msk.f32.vlgmr.msra.gmra.mrb[0].mxu1 %vm301_vm1, %v1514_v25 }
 0x1af   : > { %v454_v14 = vmul.f32 %v438_v12, %v1514_v25  ;;  %1073 = vmatprep.mubr.msk.f32.mxu1 %vm1330_vm0, %v1331_v1  ;;  %v579_v25 = vld [vmem:[%s1661_s6 + $0x20] sm:$0xff]  ;;  %1124 = vmatpush3.bf16.msra.mxu1 %v1123_v53 }
 0x1b0   : > { %v1105_v27 = vpack.c.bf16 %v580_v26, %v579_v25  ;;  %1125 = vmatprep.subr.bf16.mxu1 %v1329_v0 }
 0x1b1   : > { %v1221_v15 = vpack.i.bf16 %v454_v14, %v453_v13 }
 0x1b2   : > { %1106 = vmatpush3.bf16.msra.mxu0 %v1105_v27 }
 0x1b3   : > { %1222 = vrot.lane.b32.xlu1 %v1221_v15, %s1334_s20  ;;  %1107 = vmatprep.subr.bf16.mxu0 %v1329_v0 }
 0x1b6   : > { %1109 = vmatpush3.bf16.msra.mxu0 %v1108_v30 }
 0x1b7   : > { %1110 = vmatprep.subr.bf16.mxu0 %v1329_v0 }
 0x215   : > { %v1213_v37 = vpop.permute.xlu1 %1212 }
 0x216   : > { %v1215_v39 = vunpack.i.h.bf16 %v1213_v37  ;;  %v1214_v40 = vunpack.i.l.bf16 %v1213_v37 }
 0x218   : > { %v1114_v43 = vpack.c.bf16 %v1215_v39, %v1214_v40 }
 0x21d   : > { %v1218_v42 = vpop.permute.xlu1 %1217 }
 0x21e   : > { %v1220_v44 = vunpack.i.h.bf16 %v1218_v42  ;;  %v1219_v45 = vunpack.i.l.bf16 %v1218_v42 }
 0x220   : > { %v1117_v47 = vpack.c.bf16 %v1220_v44, %v1219_v45 }
 0x225   : > { %v1223_v46 = vpop.permute.xlu1 %1222 }
 0x226   : > { %v1225_v48 = vunpack.i.h.bf16 %v1223_v46  ;;  %v1224_v49 = vunpack.i.l.bf16 %v1223_v46 }
 0x228   : > { %v1120_v50 = vpack.c.bf16 %v1225_v48, %v1224_v49 }
 0x281   : > { %v564_v19 = vpop.f32.mrb[0].mxu1 }
 0x282   : > { %v1026_v20 = vpop.f32.mrb[1].mxu1  ;;  %v569_v21 = vsel %vm568_vm3, %v564_v19, -inf }
 0x283   : > { %570 = vmax.xlane.f32.xlu0 %v569_v21 }
 0x299   : > { %1207 = vrot.lane.b32.xlu0 %v1206_v56, %s1334_s20  ;;  %s282_s20 = sand.u32 1, %s1316_s25  }
 0x29a   : > { %s939_s8 = sshll.u32 %s282_s20, 3  ;;  %s849_s14 = scalar_lea.sflag [#allocation4], %s282_s20 }
 0x29b   : > { %s284_s15 = scalar_lea.vmem [#allocation5], %s939_s8 }
 0x29c   : > { %s862_s16 = sshll.u32 %s284_s15, 4  ;;  %s1614_s16 = int_to_ptr.vmem [resolvable:$true] %s862_s16 }
 0x29d   : > { %s1258_s21 = scalar_lea.vmem %s1614_s16, 128  ;;  %p1265_p2 = scmp.lt.s32.totalorder %s1614_s16, %s1263_s22 }
 0x29e   : > { %p1259_p6 = scmp.ne.s32.totalorder %s1614_s16, %s1258_s21  ;;  %p1266_p3 = scmp.lt.s32.totalorder %s1264_s23, %s1258_s21 }
 0x2a0   : > { %p1260_p10 = pnand %p1259_p6, %p1675_p9  ;;  %p1267_p4 = por %p1266_p3, %p1265_p2 }
 0x2a2   : > { %p1261_p12 = pneg %p1260_p10 }
 0x2a4   : > { %p1268_p7 = pnand %p1267_p4, %p1261_p12 }
 0x310   : > { %v571_v31 = vpop.xlane.xlu0 %570 }
 0x311   : > { %v572_v32 = vsub.f32 %v564_v19, %v571_v31 }
 0x313   : > { %v573_v33 = vmul.f32 1.442695, %v572_v32 }
 0x314   : > { %v1208_v34 = vpop.permute.xlu0 %1207 }
 0x315   : > { %1226 = vpow2.f32 %v573_v33  ;;  %v1210_v35 = vunpack.i.h.bf16 %v1208_v34  ;;  %v1209_v36 = vunpack.i.l.bf16 %v1208_v34 }
 0x317   : > { %v1111_v41 = vpack.c.bf16 %v1210_v35, %v1209_v36 }
 0x31f   : > { %v1227_v38 = vpop.eup %1226 }
 0x320   : > { %1044 = vmatmul.mubr.msk.f32.vlgmr.msra.gmra.mrb[2].mxu0 %vm568_vm3, %v1227_v38 }
 0x321   : > { %1112 = vmatpush3.bf16.msra.mxu0 %v1111_v41  ;;  %1062 = vmatprep.mubr.msk.f32.mxu0 %vm1330_vm0, %v1331_v1  ;;  %v765_v1 = vld [vmem:[#allocation2 + $0x10] sm:$0xff] }
 0x322   : > { %1113 = vmatprep.subr.bf16.mxu0 %v1329_v0  ;;  %v1126_v55 = vpack.c.bf16 %v766_v54, %v765_v1 }
 0x324   : > { %1127 = vmatpush3.bf16.msra.mxu1 %v1126_v55 }
 0x325   : > { %1115 = vmatpush3.bf16.msra.mxu0 %v1114_v43 }
 0x326   : > { %1116 = vmatprep.subr.bf16.mxu0 %v1329_v0 }
 0x329   : > { %1118 = vmatpush3.bf16.msra.mxu0 %v1117_v47 }
 0x32a   : > { %1119 = vmatprep.subr.bf16.mxu0 %v1329_v0 }
 0x32d   : > { %1121 = vmatpush3.bf16.msra.mxu0 %v1120_v50 }
 0x3f3   : > { %v652_v56 = vpop.f32.mrb[2].mxu0 }
 0x3f4   : > { %1228 = vrcp.f32 %v652_v56  ;;  %v1045_v57 = vpop.f32.mrb[3].mxu0 }
 0x3fe   : > { %v1229_v58 = vpop.eup %1228 }
 0x3ff   : > { %v657_v59 = vmul.f32 %v1229_v58, %v1227_v38 }
 0x401   : > { %1063 = vmatmul.mubr.msk.f32.vlgmr.msra.gmra.mrb[4].mxu0 %vm568_vm3, %v657_v59 }
 0x4d4   : > { %v759_v60 = vpop.f32.mrb[4].mxu0 }
 0x4d5   : > { %v1064_v61 = vpop.f32.mrb[5].mxu0  ;;  %1074 = vmatmul.mubr.msk.f32.vlgmr.msra.gmra.mrb[2].mxu1 %vm301_vm1, %v759_v60 }
 0x5a8   : > { %v843_v0 = vpop.f32.mrb[2].mxu1 }
 0x5a9   : > { %v844_v63 = vadd.f32 %v954_v62, %v843_v0  ;;  %v1075_v2 = vpop.f32.mrb[3].mxu1 }
 0x5ab   : > { %847 = vst.msk [vmem:[%s284_s15] sm:$0xff] %vm301_vm1, %v844_v63 }
 0x5ac   : > { %1271 = shalt.err (!%p1268_p7)
}
 0x5ad   : > { %s1272_s20 = scalar_lea.hbm %s1612_s19, 128  ;;  %s1276_s17 = scalar_lea.hbm %s1662_s7, 256 }
 0x5ae   : > { %p1273_p8 = scmp.ne.s32.totalorder %s1612_s19, %s1272_s20  ;;  %p1277_p1 = scmp.lt.u32.totalorder %s1612_s19, %s1662_s7 }
 0x5af   : > { %p1278_p0 = scmp.lt.u32.totalorder %s1276_s17, %s1272_s20  ;;  %p1280_p6 = scmp.lt.u32.totalorder %s1272_s20, %s1612_s19 }
 0x5b0   : > { %p1274_p11 = pnand %p1273_p8, %p1675_p9 }
 0x5b1   : > { %p1279_p5 = por %p1278_p0, %p1277_p1 }
 0x5b2   : > { %p1275_p13 = pneg %p1274_p11 }
 0x5b3   : > { %p1281_p10 = por %p1280_p6, %p1279_p5 }
 0x5b5   : > { %p1282_p12 = pnand %p1281_p10, %p1275_p13 }
 0x5b7   : > { %1285 = shalt.err (!%p1282_p12)
}
 0x5b8   : > { %1132 = dma.vmem_to_hbm [thread:$0]  (%p1675_p9), %s1614_s16, 128, %s1612_s19, %s849_s14  }
 0x5b9 PF: > { %p1144_p2 = scmp.ge.s32.totalorder %s1324_s27, 2  ;;  %s874_s18 = sand.u32 1, %s1312_s24  }
 0x5ba   : > { %p1676_p3 = scmp.ne.s32.totalorder %s1667_s12, 0  ;;  %s875_s13 = scalar_lea.sflag [#allocation4], %s874_s18 }
 0x5bc   : > { %p1139_p4 = pnand %p1144_p2, %p1676_p3 }
 0x5be   : > { %1307 = dma.done.wait (!%p1139_p4), %s875_s13, 128  }
 0x5bf   : > { %1309 = vsyncadd (!%p1139_p4), %s875_s13, 4294967168  ;;  %p18_p7 = scmp.ge.s32.totalorder %s1401_s30, 4   ;;  %s1677_s24 = smov %s1316_s25 }
 0x5c0   : > { %s1678_s25 = smov %s1320_s26  ;;  %s1679_s26 = smov %s1412_s10 }
 0x5c1   : > { %s1680_s27 = smov %s1401_s30  ;;  %20 = sbr.rel (!%p18_p7) target bundleno = 4 (0x4), region = 88 }
 0x5c8   :  { %880 = vsyncpa [#allocation3], 1 }
 0x5c9   :  { %882 = vsyncpa [#allocation3 + $0x1], 1 }
 0x5ca   :  { %883 = vsyncpa [#allocation4], 1 }
 0x5cb   :  { %885 = vsyncpa [#allocation4 + $0x1], 1 }

</bundles_post_ra>
